<compile_context>
chip_gen: v5e
topology: v5e:2x2
jax: 0.10.0
libtpu: 0.0.40
codegen_flags: <defaults>
</compile_context>

<pallas_src>
import functools

import jax
import jax.numpy as jnp
from jax.experimental import pallas as pl
from jax.experimental.pallas import tpu as pltpu


STATE_DIM = 4        # CartPole-v1 observation dim
ACTION_DIM = 2       # CartPole-v1 action dim
HIDDEN = 128
OUT_PAD = 8          # fc3 output padded to a sublane multiple (NOT a full lane)
BATCH_TILE_CAP = 1024


def _round_up(x, m):
    return (x + m - 1) // m * m


def qnetwork_kernel(x_ref, w1_ref, b1_ref, w2_ref, b2_ref, w3_ref, b3_ref,
                    out_ref, *, use_bf16=False):
    """One batch tile of the whole network. Weights are VMEM-resident blocks."""
    x = x_ref[...]                                   # [TB, STATE_DIM]
    w1 = w1_ref[...]                                 # [STATE_DIM, H]
    tb = x.shape[0]

    # ---- fc1 on the VPU: tiny K (=4), skip the MXU fill/drain round trip. ----
    acc = jnp.broadcast_to(b1_ref[...], (tb, HIDDEN))        # hoisted broadcast
    for k in range(STATE_DIM):                                # static unroll (4)
        acc = acc + x[:, k:k + 1] * w1[k:k + 1, :]
    h1 = jnp.maximum(acc, 0.0)                                # [TB, H] f32

    # ---- fc2 (MXU) + bias + residual + relu (elementwise kept in f32) ----
    h1_mm = h1.astype(jnp.bfloat16) if use_bf16 else h1
    h2 = jnp.dot(h1_mm, w2_ref[...], preferred_element_type=jnp.float32)
    h2 = jnp.maximum(h2 + b2_ref[...] + h1, 0.0)              # [TB, H] f32

    # ---- fc3 (MXU), output padded only to 8 lanes ----
    h2_mm = h2.astype(jnp.bfloat16) if use_bf16 else h2
    out = jnp.dot(h2_mm, w3_ref[...], preferred_element_type=jnp.float32)
    out_ref[...] = (out + b3_ref[...]).astype(out_ref.dtype)  # [TB, OUT_PAD]


def prepare_params(params, *, use_bf16=False):
    """One-time parameter prep: pad fc3 to OUT_PAD lanes, optionally pre-cast
    the MXU weights to bf16.  Call once; reuse the result for every forward."""
    w3p = jnp.pad(params["w3"], ((0, 0), (0, OUT_PAD - ACTION_DIM)))
    b3p = jnp.pad(params["b3"], ((0, 0), (0, OUT_PAD - ACTION_DIM)))
    w2 = params["w2"]
    if use_bf16:
        w2 = w2.astype(jnp.bfloat16)
        w3p = w3p.astype(jnp.bfloat16)
    return {"w1": params["w1"], "b1": params["b1"],
            "w2": w2, "b2": params["b2"],
            "w3": w3p, "b3": b3p}


def qnetwork_forward(x, prep, *, use_bf16=False, block_batch=None,
                     out_dtype=jnp.float32):
    """x: [batch, state_dim] float32. prep: output of prepare_params()."""
    batch = x.shape[0]

    if block_batch is None:
        tb = min(BATCH_TILE_CAP, _round_up(batch, 8))
        # Guarantee >=2 grid steps when the batch is big enough, so the
        # "parallel" axis actually shards across v7x's two TensorCores.
        if batch >= 16 and _round_up(batch, tb) == tb:
            tb = _round_up(pl.cdiv(batch, 2), 8)
    else:
        tb = _round_up(block_batch, 8)

    b_pad = _round_up(batch, tb)
    x_p = x if b_pad == batch else jnp.pad(x, ((0, b_pad - batch), (0, 0)))

    grid = (b_pad // tb,)

    out = pl.pallas_call(
        functools.partial(qnetwork_kernel, use_bf16=use_bf16),
        out_shape=jax.ShapeDtypeStruct((b_pad, OUT_PAD), out_dtype),
        grid=grid,
        in_specs=[
            # Activation tile streams with the batch grid axis.
            pl.BlockSpec((tb, STATE_DIM), lambda i: (i, 0)),
            # Weights / biases: constant block index -> resident across steps.
            pl.BlockSpec((STATE_DIM, HIDDEN), lambda i: (0, 0)),
            pl.BlockSpec((1, HIDDEN), lambda i: (0, 0)),
            pl.BlockSpec((HIDDEN, HIDDEN), lambda i: (0, 0)),
            pl.BlockSpec((1, HIDDEN), lambda i: (0, 0)),
            pl.BlockSpec((HIDDEN, OUT_PAD), lambda i: (0, 0)),
            pl.BlockSpec((1, OUT_PAD), lambda i: (0, 0)),
        ],
        out_specs=pl.BlockSpec((tb, OUT_PAD), lambda i: (i, 0)),
        compiler_params=pltpu.CompilerParams(
            dimension_semantics=("parallel",)),
    )(x_p, prep["w1"], prep["b1"], prep["w2"], prep["b2"], prep["w3"],
      prep["b3"])

    # Strip batch / lane padding outside the kernel (only 8 lanes wide now).
    return out[:batch, :ACTION_DIM]


def init_params(key):
    """Deterministic init mimicking PyTorch nn.Linear default (uniform ±1/sqrt(fan_in))."""
    ks = jax.random.split(key, 6)

    def lin(kw, kb, fan_in, fan_out):
        bound = 1.0 / jnp.sqrt(float(fan_in))
        w = jax.random.uniform(kw, (fan_in, fan_out), jnp.float32, -bound, bound)
        b = jax.random.uniform(kb, (1, fan_out), jnp.float32, -bound, bound)
        return w, b

    w1, b1 = lin(ks[0], ks[1], STATE_DIM, HIDDEN)
    w2, b2 = lin(ks[2], ks[3], HIDDEN, HIDDEN)
    w3, b3 = lin(ks[4], ks[5], HIDDEN, ACTION_DIM)
    return {"w1": w1, "b1": b1, "w2": w2, "b2": b2, "w3": w3, "b3": b3}


def reference_forward(x, p):
    """Pure-JAX reference for a correctness check."""
    h1 = jnp.maximum(x @ p["w1"] + p["b1"], 0.0)
    h2 = jnp.maximum(h1 @ p["w2"] + p["b2"] + h1, 0.0)
    return h2 @ p["w3"] + p["b3"]


if __name__ == "__main__":
    key = jax.random.PRNGKey(0)
    k_params, k_x1, k_x2 = jax.random.split(key, 3)

    params = init_params(k_params)
    prep = prepare_params(params)                       # f32 weights, padded once

    # --- small batch, f32 path (single grid step) ---
    batch = 8
    x = jax.random.normal(k_x1, (batch, STATE_DIM), jnp.float32)
    out = jax.block_until_ready(qnetwork_forward(x, prep))
    ref = reference_forward(x, params)
    assert out.shape == (batch, ACTION_DIM), out.shape
    assert jnp.allclose(out, ref, atol=1e-5, rtol=1e-5), "mismatch vs reference (f32)"

    # --- larger batch, default tiling (splits into 2 steps -> both v7x TCs) ---
    batch2 = 160
    x2 = jax.random.normal(k_x2, (batch2, STATE_DIM), jnp.float32)
    out2 = jax.block_until_ready(qnetwork_forward(x2, prep))
    ref2 = reference_forward(x2, params)
    assert out2.shape == (batch2, ACTION_DIM), out2.shape
    assert jnp.allclose(out2, ref2, atol=1e-5, rtol=1e-5), "mismatch vs reference (default tile)"

    # --- explicit small tile: 3 grid steps + batch padding exercised ---
    out2b = jax.block_until_ready(qnetwork_forward(x2, prep, block_batch=64))
    assert jnp.allclose(out2b, ref2, atol=1e-5, rtol=1e-5), "mismatch vs reference (tiled)"

    # --- bf16 MXU path (weights pre-cast once, f32 accumulation / elementwise) ---
    prep_bf16 = prepare_params(params, use_bf16=True)
    out_bf16 = jax.block_until_ready(
        qnetwork_forward(x2, prep_bf16, use_bf16=True))
    assert jnp.allclose(out_bf16, ref2, atol=1e-2, rtol=1e-2), "mismatch vs reference (bf16)"

    print("KERNEL_OK")
</pallas_src>

<mosaic_0001>
module attributes {stable_mosaic.version = 11 : i64} {
  func.func @qnetwork_kernel(%arg0: i32, %arg1: memref<8x4xf32, #tpu.memory_space<vmem>>, %arg2: memref<4x128xf32, #tpu.memory_space<vmem>>, %arg3: memref<1x128xf32, #tpu.memory_space<vmem>>, %arg4: memref<128x128xf32, #tpu.memory_space<vmem>>, %arg5: memref<1x128xf32, #tpu.memory_space<vmem>>, %arg6: memref<128x8xf32, #tpu.memory_space<vmem>>, %arg7: memref<1x8xf32, #tpu.memory_space<vmem>>, %arg8: memref<8x8xf32, #tpu.memory_space<vmem>>) attributes {dimension_semantics = [#tpu.dimension_semantics<parallel>], iteration_bounds = array<i64: 1>, scalar_prefetch = 0 : i64, scratch_operands = 0 : i64, tpu.core_type = #tpu.core_type<tc>, window_params = [{transform_indices = @transform_0, window_bounds = array<i64: 8, 4>}, {pipeline_mode = #tpu.pipeline_mode<synchronous>, transform_indices = @transform_1, window_bounds = array<i64: 4, 128>}, {pipeline_mode = #tpu.pipeline_mode<synchronous>, transform_indices = @transform_2, window_bounds = array<i64: 1, 128>}, {pipeline_mode = #tpu.pipeline_mode<synchronous>, transform_indices = @transform_3, window_bounds = array<i64: 128, 128>}, {pipeline_mode = #tpu.pipeline_mode<synchronous>, transform_indices = @transform_4, window_bounds = array<i64: 1, 128>}, {pipeline_mode = #tpu.pipeline_mode<synchronous>, transform_indices = @transform_5, window_bounds = array<i64: 128, 8>}, {pipeline_mode = #tpu.pipeline_mode<synchronous>, transform_indices = @transform_6, window_bounds = array<i64: 1, 8>}, {transform_indices = @transform_7, window_bounds = array<i64: 8, 8>}]} {
    %c0 = arith.constant 0 : index
    %c0_0 = arith.constant 0 : index
    %0 = vector.load %arg1[%c0, %c0_0] : memref<8x4xf32, #tpu.memory_space<vmem>>, vector<8x4xf32>
    %c0_1 = arith.constant 0 : index
    %c0_2 = arith.constant 0 : index
    %1 = vector.load %arg2[%c0_1, %c0_2] : memref<4x128xf32, #tpu.memory_space<vmem>>, vector<4x128xf32>
    %c0_3 = arith.constant 0 : index
    %c0_4 = arith.constant 0 : index
    %2 = vector.load %arg3[%c0_3, %c0_4] : memref<1x128xf32, #tpu.memory_space<vmem>>, vector<1x128xf32>
    %3 = vector.shape_cast %2 : vector<1x128xf32> to vector<1x128xf32>
    %4 = vector.broadcast %3 : vector<1x128xf32> to vector<8x128xf32>
    %5 = vector.extract_strided_slice %0 {offsets = [0, 0], sizes = [8, 1], strides = [1, 1]} : vector<8x4xf32> to vector<8x1xf32>
    %6 = vector.extract_strided_slice %1 {offsets = [0, 0], sizes = [1, 128], strides = [1, 1]} : vector<4x128xf32> to vector<1x128xf32>
    %7 = vector.broadcast %5 : vector<8x1xf32> to vector<8x128xf32>
    %8 = vector.broadcast %6 : vector<1x128xf32> to vector<8x128xf32>
    %9 = arith.mulf %7, %8 : vector<8x128xf32>
    %10 = arith.addf %4, %9 : vector<8x128xf32>
    %11 = vector.extract_strided_slice %0 {offsets = [0, 1], sizes = [8, 1], strides = [1, 1]} : vector<8x4xf32> to vector<8x1xf32>
    %12 = vector.extract_strided_slice %1 {offsets = [1, 0], sizes = [1, 128], strides = [1, 1]} : vector<4x128xf32> to vector<1x128xf32>
    %13 = vector.broadcast %11 : vector<8x1xf32> to vector<8x128xf32>
    %14 = vector.broadcast %12 : vector<1x128xf32> to vector<8x128xf32>
    %15 = arith.mulf %13, %14 : vector<8x128xf32>
    %16 = arith.addf %10, %15 : vector<8x128xf32>
    %17 = vector.extract_strided_slice %0 {offsets = [0, 2], sizes = [8, 1], strides = [1, 1]} : vector<8x4xf32> to vector<8x1xf32>
    %18 = vector.extract_strided_slice %1 {offsets = [2, 0], sizes = [1, 128], strides = [1, 1]} : vector<4x128xf32> to vector<1x128xf32>
    %19 = vector.broadcast %17 : vector<8x1xf32> to vector<8x128xf32>
    %20 = vector.broadcast %18 : vector<1x128xf32> to vector<8x128xf32>
    %21 = arith.mulf %19, %20 : vector<8x128xf32>
    %22 = arith.addf %16, %21 : vector<8x128xf32>
    %23 = vector.extract_strided_slice %0 {offsets = [0, 3], sizes = [8, 1], strides = [1, 1]} : vector<8x4xf32> to vector<8x1xf32>
    %24 = vector.extract_strided_slice %1 {offsets = [3, 0], sizes = [1, 128], strides = [1, 1]} : vector<4x128xf32> to vector<1x128xf32>
    %25 = vector.broadcast %23 : vector<8x1xf32> to vector<8x128xf32>
    %26 = vector.broadcast %24 : vector<1x128xf32> to vector<8x128xf32>
    %27 = arith.mulf %25, %26 : vector<8x128xf32>
    %28 = arith.addf %22, %27 : vector<8x128xf32>
    %cst = arith.constant 0.000000e+00 : f32
    %29 = vector.broadcast %cst : f32 to vector<8x128xf32>
    %30 = arith.maximumf %28, %29 : vector<8x128xf32>
    %c0_5 = arith.constant 0 : index
    %c0_6 = arith.constant 0 : index
    %31 = vector.load %arg4[%c0_5, %c0_6] : memref<128x128xf32, #tpu.memory_space<vmem>>, vector<128x128xf32>
    %cst_7 = arith.constant dense<0.000000e+00> : vector<8x128xf32>
    %32 = tpu.matmul %30, %31, %cst_7 {dimension_numbers = #tpu.dot_dimension_numbers<[1], [0], [0], [1], [0, 0, 1, 1], [], []>} : vector<8x128xf32>, vector<128x128xf32>, vector<8x128xf32> -> vector<8x128xf32>
    %c0_8 = arith.constant 0 : index
    %c0_9 = arith.constant 0 : index
    %33 = vector.load %arg5[%c0_8, %c0_9] : memref<1x128xf32, #tpu.memory_space<vmem>>, vector<1x128xf32>
    %34 = vector.broadcast %33 : vector<1x128xf32> to vector<8x128xf32>
    %35 = arith.addf %32, %34 : vector<8x128xf32>
    %36 = arith.addf %35, %30 : vector<8x128xf32>
    %cst_10 = arith.constant 0.000000e+00 : f32
    %37 = vector.broadcast %cst_10 : f32 to vector<8x128xf32>
    %38 = arith.maximumf %36, %37 : vector<8x128xf32>
    %c0_11 = arith.constant 0 : index
    %c0_12 = arith.constant 0 : index
    %39 = vector.load %arg6[%c0_11, %c0_12] : memref<128x8xf32, #tpu.memory_space<vmem>>, vector<128x8xf32>
    %cst_13 = arith.constant dense<0.000000e+00> : vector<8x8xf32>
    %40 = tpu.matmul %38, %39, %cst_13 {dimension_numbers = #tpu.dot_dimension_numbers<[1], [0], [0], [1], [0, 0, 1, 1], [], []>} : vector<8x128xf32>, vector<128x8xf32>, vector<8x8xf32> -> vector<8x8xf32>
    %c0_14 = arith.constant 0 : index
    %c0_15 = arith.constant 0 : index
    %41 = vector.load %arg7[%c0_14, %c0_15] : memref<1x8xf32, #tpu.memory_space<vmem>>, vector<1x8xf32>
    %42 = vector.broadcast %41 : vector<1x8xf32> to vector<8x8xf32>
    %43 = arith.addf %40, %42 : vector<8x8xf32>
    %c0_16 = arith.constant 0 : index
    %c0_17 = arith.constant 0 : index
    %44 = vector.load %arg8[%c0_16, %c0_17] : memref<8x8xf32, #tpu.memory_space<vmem>>, vector<8x8xf32>
    tpu.vector_store %arg8[%c0_16, %c0_17], %43 {strides = array<i32>} : memref<8x8xf32, #tpu.memory_space<vmem>>, vector<8x8xf32>,
    return
  }
  func.func @transform_0(%arg0: i32) -> (i32, i32) {
    %c0_i32 = arith.constant 0 : i32
    %c0_i32_0 = arith.constant 0 : i32
    return %arg0, %c0_i32 : i32, i32
  }
  func.func @transform_1(%arg0: i32) -> (i32, i32) {
    %c0_i32 = arith.constant 0 : i32
    %c0_i32_0 = arith.constant 0 : i32
    %c0_i32_1 = arith.constant 0 : i32
    return %c0_i32, %c0_i32_0 : i32, i32
  }
  func.func @transform_2(%arg0: i32) -> (i32, i32) {
    %c0_i32 = arith.constant 0 : i32
    %c0_i32_0 = arith.constant 0 : i32
    %c0_i32_1 = arith.constant 0 : i32
    return %c0_i32, %c0_i32_0 : i32, i32
  }
  func.func @transform_3(%arg0: i32) -> (i32, i32) {
    %c0_i32 = arith.constant 0 : i32
    %c0_i32_0 = arith.constant 0 : i32
    %c0_i32_1 = arith.constant 0 : i32
    return %c0_i32, %c0_i32_0 : i32, i32
  }
  func.func @transform_4(%arg0: i32) -> (i32, i32) {
    %c0_i32 = arith.constant 0 : i32
    %c0_i32_0 = arith.constant 0 : i32
    %c0_i32_1 = arith.constant 0 : i32
    return %c0_i32, %c0_i32_0 : i32, i32
  }
  func.func @transform_5(%arg0: i32) -> (i32, i32) {
    %c0_i32 = arith.constant 0 : i32
    %c0_i32_0 = arith.constant 0 : i32
    %c0_i32_1 = arith.constant 0 : i32
    return %c0_i32, %c0_i32_0 : i32, i32
  }
  func.func @transform_6(%arg0: i32) -> (i32, i32) {
    %c0_i32 = arith.constant 0 : i32
    %c0_i32_0 = arith.constant 0 : i32
    %c0_i32_1 = arith.constant 0 : i32
    return %c0_i32, %c0_i32_0 : i32, i32
  }
  func.func @transform_7(%arg0: i32) -> (i32, i32) {
    %c0_i32 = arith.constant 0 : i32
    %c0_i32_0 = arith.constant 0 : i32
    return %arg0, %c0_i32 : i32, i32
  }
}

</mosaic_0001>

<bundles_post_ra>
// kernel: tpu_custom_call.1
= control target key start
LH: loop header
LB: loop body
LE: loop exit
PB: predicated region body
PF: predicated region fallthrough
CT: control target
= control target key end

     0   :  { %v202_v2 = vmov 0   ;;  %v203_v3 = vmov 2   ;;  %s361_s0 = inlined_call_operand.vmem [shape: f32[8,4], index: 0, kind: input, shape index: {}]   ;;  %s362_s1 = inlined_call_operand.vmem [shape: f32[4,128], index: 1, kind: input, shape index: {}]   ;;  %s363_s2 = inlined_call_operand.vmem [shape: f32[1,128], index: 2, kind: input, shape index: {}]   ;;  %s364_s3 = inlined_call_operand.vmem [shape: f32[128,128], index: 3, kind: input, shape index: {}]   ;;  %s365_s4 = inlined_call_operand.vmem [shape: f32[1,128], index: 4, kind: input, shape index: {}]   ;;  %s366_s5 = inlined_call_operand.vmem [shape: f32[128,8], index: 5, kind: input, shape index: {}]   ;;  %s367_s6 = inlined_call_operand.vmem [shape: f32[1,8], index: 6, kind: input, shape index: {}]   ;;  %s368_s7 = inlined_call_operand.hbm [shape: f32[8,8], index: 7, kind: output, shape index: {}]  }
   0x1   :  { %v27_v0 = vld [vmem:[%s361_s0] sm:$0xff]  ;;  %v78_v1 = vld [vmem:[%s364_s3 + $0x78] sm:$0xff]  ;;  %168 = vset.pattern.permute.xlu0 %v202_v2  ;;  %170 = vset.pattern.permute.xlu1 %v203_v3  ;;  %v77_v4 = vld [vmem:[%s364_s3 + $0x70] sm:$0xff] }
   0x2   :  { %35 = vperm.xlu0 %168, %v27_v0   ;;  %49 = vperm.xlu1 %170, %v27_v0   ;;  %v76_v5 = vld [vmem:[%s364_s3 + $0x68] sm:$0xff] }
   0x3   :  { %83 = vmatpush.msra.mxu0 %v78_v1 }
   0x4   :  { %12 = vsyncpa [#allocation3], 0  ;;  %v75_v6 = vld [vmem:[%s364_s3 + $0x60] sm:$0xff]  ;;  %v74_v7 = vld [vmem:[%s364_s3 + $0x58] sm:$0xff]  ;;  %v204_v8 = vmov 1   ;;  %v205_v9 = vmov 3  }
   0x5   :  { %84 = vmatpush.msra.mxu0 %v77_v4  ;;  %v73_v10 = vld [vmem:[%s364_s3 + $0x50] sm:$0xff]  ;;  %v72_v11 = vld [vmem:[%s364_s3 + $0x48] sm:$0xff]  ;;  %v71_v12 = vld [vmem:[%s364_s3 + $0x40] sm:$0xff]  ;;  %s206_s22 = smov [#allocation2]   ;;  %vm145_vm0 = vcmask 64512  }
   0x6   :  { %v70_v13 = vld [vmem:[%s364_s3 + $0x38] sm:$0xff]  ;;  %v69_v14 = vld [vmem:[%s364_s3 + $0x30] sm:$0xff]  ;;  %v68_v15 = vld [vmem:[%s364_s3 + $0x28] sm:$0xff]  ;;  %s152_s23 = sshll.u32 %s206_s22, 4  ;;  %s153_s23 = int_to_ptr.vmem [resolvable:$true] %s152_s23 }
   0x7   :  { %85 = vmatpush.msra.mxu0 %v76_v5  ;;  %v67_v16 = vld [vmem:[%s364_s3 + $0x20] sm:$0xff]  ;;  %v66_v17 = vld [vmem:[%s364_s3 + $0x18] sm:$0xff]  ;;  %v65_v18 = vld [vmem:[%s364_s3 + $0x10] sm:$0xff] }
   0x8   :  { %v64_v19 = vld [vmem:[%s364_s3 + $0x8] sm:$0xff]  ;;  %v63_v20 = vld [vmem:[%s364_s3] sm:$0xff]  ;;  %v120_v21 = vld [vmem:[%s366_s5 + $0x78] sm:$0xff] }
   0x9   :  { %86 = vmatpush.msra.mxu0 %v75_v6  ;;  %v119_v22 = vld [vmem:[%s366_s5 + $0x70] sm:$0xff]  ;;  %125 = vmatpush.msra.mxu1 %v120_v21  ;;  %v118_v23 = vld [vmem:[%s366_s5 + $0x68] sm:$0xff]  ;;  %v117_v24 = vld [vmem:[%s366_s5 + $0x60] sm:$0xff] }
   0xa   :  { %169 = vset.pattern.permute.xlu0 %v204_v8  ;;  %171 = vset.pattern.permute.xlu1 %v205_v9  ;;  %v116_v25 = vld [vmem:[%s366_s5 + $0x58] sm:$0xff]  ;;  %v115_v26 = vld [vmem:[%s366_s5 + $0x50] sm:$0xff]  ;;  %v114_v27 = vld [vmem:[%s366_s5 + $0x48] sm:$0xff] }
   0xb   :  { %42 = vperm.xlu0 %169, %v27_v0   ;;  %56 = vperm.xlu1 %171, %v27_v0   ;;  %v28_v28 = vld [vmem:[%s362_s1] sm:$0xf]  ;;  %v112_v33 = vld [vmem:[%s366_s5 + $0x38] sm:$0xff]  ;;  %v111_v34 = vld [vmem:[%s366_s5 + $0x30] sm:$0xff] }
   0xc   :  { %87 = vmatpush.msra.mxu0 %v74_v7  ;;  %126 = vmatpush.msra.mxu1 %v119_v22  ;;  %v113_v31 = vld [vmem:[%s366_s5 + $0x40] sm:$0xff]  ;;  %v38_v32 = vperm.slane %v28_v28, 0  ;;  %v45_v37 = vperm.slane %v28_v28, 1  ;;  %v110_v38 = vld [vmem:[%s366_s5 + $0x28] sm:$0xff]  ;;  %v52_v39 = vperm.slane %v28_v28, 2  ;;  %v59_v40 = vperm.slane %v28_v28, 3 }
   0xd   :  { %v173_v35 = vld [vmem:[%s363_s2] ss:$0 sm:$0xff]  ;;  %v108_v52 = vld [vmem:[%s366_s5 + $0x18] sm:$0xff]  ;;  %v107_v53 = vld [vmem:[%s366_s5 + $0x10] sm:$0xff] }
   0xe   :  { %88 = vmatpush.msra.mxu0 %v73_v10  ;;  %127 = vmatpush.msra.mxu1 %v118_v23  ;;  %v109_v41 = vld [vmem:[%s366_s5 + $0x20] sm:$0xff]  ;;  %v106_v54 = vld [vmem:[%s366_s5 + $0x8] sm:$0xff] }
   0xf   :  { %v105_v55 = vld [vmem:[%s366_s5] sm:$0xff]  ;;  %s154_s5 = sshll.u32 %s368_s7, 4  ;;  %s155_s5 = int_to_ptr.hbm [resolvable:$true] %s154_s5 }
  0x10   :  { %89 = vmatpush.msra.mxu0 %v72_v11  ;;  %128 = vmatpush.msra.mxu1 %v117_v24  ;;  %v174_v56 = vld [vmem:[%s365_s4] ss:$0 sm:$0xff] }
  0x11   :  { %v175_v61 = vld [vmem:[%s367_s6] ss:$0 sm:$0xff] }
  0x12   :  { %90 = vmatpush.msra.mxu0 %v71_v12  ;;  %129 = vmatpush.msra.mxu1 %v116_v25 }
  0x13   :  { %172 = vset.pattern.permute.xlu0 %v205_v9 }
  0x14   :  { %91 = vmatpush.msra.mxu0 %v70_v13  ;;  %130 = vmatpush.msra.mxu1 %v115_v26 }
  0x16   :  { %92 = vmatpush.msra.mxu0 %v69_v14  ;;  %131 = vmatpush.msra.mxu1 %v114_v27 }
  0x18   :  { %93 = vmatpush.msra.mxu0 %v68_v15  ;;  %132 = vmatpush.msra.mxu1 %v113_v31 }
  0x1a   :  { %94 = vmatpush.msra.mxu0 %v67_v16  ;;  %133 = vmatpush.msra.mxu1 %v112_v33 }
  0x1c   :  { %95 = vmatpush.msra.mxu0 %v66_v17  ;;  %134 = vmatpush.msra.mxu1 %v111_v34 }
  0x1e   :  { %96 = vmatpush.msra.mxu0 %v65_v18  ;;  %135 = vmatpush.msra.mxu1 %v110_v38 }
  0x20   :  { %97 = vmatpush.msra.mxu0 %v64_v19  ;;  %136 = vmatpush.msra.mxu1 %v109_v41 }
  0x22   :  { %98 = vmatpush.msra.mxu0 %v63_v20  ;;  %137 = vmatpush.msra.mxu1 %v108_v52 }
  0x24   :  { %138 = vmatpush.msra.mxu1 %v107_v53 }
  0x26   :  { %139 = vmatpush.msra.mxu1 %v106_v54 }
  0x28   :  { %140 = vmatpush.msra.mxu1 %v105_v55 }
  0x74   :  { %v36_v29 = vpop.permute.xlu0 %35  ;;  %v50_v30 = vpop.permute.xlu1 %49 }
  0x75   :  { %v39_v36 = vmul.f32 %v38_v32, %v36_v29  ;;  %v53_v46 = vmul.f32 %v52_v39, %v50_v30 }
  0x77   :  { %v40_v44 = vadd.f32 %v173_v35, %v39_v36 }
  0x7d   :  { %v43_v42 = vpop.permute.xlu0 %42  ;;  %v57_v43 = vpop.permute.xlu1 %56 }
  0x7e   :  { %v46_v45 = vmul.f32 %v45_v37, %v43_v42  ;;  %v60_v48 = vmul.f32 %v59_v40, %v57_v43 }
  0x80   :  { %v47_v47 = vadd.f32 %v46_v45, %v40_v44 }
  0x82   :  { %v54_v49 = vadd.f32 %v53_v46, %v47_v47 }
  0x84   :  { %v61_v50 = vadd.f32 %v60_v48, %v54_v49 }
  0x86   :  { %v62_v51 = vmax.f32 %v61_v50, 0.0 }
  0x88   :  { %99 = vmatmul.f32.vlgmr.msra.gmra.mxu0 %v62_v51 }
 0x105   :  { %v100_v57 = vpop.f32.mrf.mxu0 }
 0x106   :  { %v101_v58 = vadd.f32 %v174_v56, %v100_v57 }
 0x108   :  { %v103_v59 = vadd.f32 %v101_v58, %v62_v51 }
 0x10a   :  { %v104_v60 = vmax.f32 %v103_v59, 0.0 }
 0x10c   :  { %141 = vmatmul.f32.vlgmr.msra.gmra.mxu1 %v104_v60 }
 0x189   :  { %v142_v62 = vpop.f32.mrf.mxu1 }
 0x18a   :  { %v143_v63 = vadd.f32 %v175_v61, %v142_v62 }
 0x18c   :  { %146 = vst.msk [vmem:[#allocation2] sm:$0xff] %vm145_vm0, %v143_v63 }
 0x18d   :  { %157 = dma.vmem_to_hbm [thread:$0]  %s153_s23, 128, %s155_s5, [#allocation3]  }
 0x18e   :  { %200 = dma.done.wait [#allocation3], 128  }
 0x18f   :  { %201 = vsyncadd [#allocation3], 4294967168 }
 0x190   :  { %162 = vsyncpa [#allocation3], 1 }

</bundles_post_ra>
